<compile_context>
chip_gen: v7x
topology: tpu7x:2x2x1
jax: 0.10.0
libtpu: 0.0.40
codegen_flags: <defaults>
</compile_context>

<pallas_src>
import functools
import math

import jax
import jax.numpy as jnp
from jax.experimental import pallas as pl
from jax.experimental.pallas import tpu as pltpu


def _modconv_kernel(x_ref, style_ref, modw_ref, modb_ref, w_ref, o_ref, xpad_ref, *,
                    H, W, KH, KW, pad, conv_scale, mod_scale, eps, demodulate):
    S = H * W
    P = pad * W + pad                      # flat halo on each side
    OC = o_ref.shape[1]

    # ---- (1) style modulation: EqualLinear(style) -> per-input-channel scale (C, 1)
    st = style_ref[0]                      # (1, style_dim)
    mw = modw_ref[...]                     # (C, style_dim)
    s = jnp.sum(mw * st, axis=1, keepdims=True) * mod_scale + modb_ref[...]   # (C, 1)

    # ---- (2) style demodulation (mean over input channels)
    if demodulate:
        s = s * jax.lax.rsqrt(jnp.mean(s * s, axis=0, keepdims=True) + eps)

    # ---- (3) modulate the input block (C, S)
    x = x_ref[0].astype(jnp.float32) * s

    # Build the zero-padded, spatially-flattened input in VMEM (conv halo handled
    # in-kernel; no HBM-side padding copies).
    xpad_ref[...] = jnp.zeros_like(xpad_ref)
    xpad_ref[:, P:P + S] = x

    # ---- (4) weight demodulation (batch-independent since style was applied to x)
    w3 = w_ref[...].astype(jnp.float32) * conv_scale          # (KH*KW, OC, C)
    if demodulate:
        ssq = jnp.sum(w3 * w3, axis=2, keepdims=True)         # (KH*KW, OC, 1)
        dem = jax.lax.rsqrt(jnp.sum(ssq, axis=0) + eps)       # (OC, 1)
    else:
        dem = None

    # ---- (5) 'same' grouped conv as KH*KW shifted matmuls on the MXU
    ww = jax.lax.broadcasted_iota(jnp.int32, (1, S), 1) % W   # column index per pixel

    acc = jnp.zeros((OC, S), jnp.float32)
    t = 0
    for dy in range(KH):
        for dx in range(KW):
            oy = dy - pad
            ox = dx - pad
            shift = oy * W + ox
            start = P + shift                                  # always in [0, 2P]
            xs = xpad_ref[:, start:start + S]                  # (C, S) shifted window
            # horizontal out-of-image pixels wrap into neighbouring rows -> mask them
            if ox < 0:
                xs = jnp.where(ww >= -ox, xs, 0.0)
            elif ox > 0:
                xs = jnp.where(ww < W - ox, xs, 0.0)
            wt = w3[t]                                         # (OC, C)
            if demodulate:
                wt = wt * dem
            acc = acc + jnp.dot(wt, xs, preferred_element_type=jnp.float32)
            t += 1

    o_ref[0] = acc.astype(o_ref.dtype)


def modulated_conv2d(x, style, conv_weight, mod_weight, mod_bias, *,
                     demodulate=True, eps=1e-8, lr_mul=1.0):
    """ModulatedConv2d.forward (no up/down-sampling, 2-D style).

    x           : (B, Cin, H, W)
    style       : (B, style_dim)
    conv_weight : (Cout, Cin, KH, KW)      (== module.weight[0])
    mod_weight  : (Cin, style_dim)         (EqualLinear weight of .modulation)
    mod_bias    : (Cin,)                   (EqualLinear bias)
    returns     : (B, Cout, H, W)
    """
    B, C, H, W = x.shape
    OC, Cw, KH, KW = conv_weight.shape
    assert Cw == C and KH == KW, "square kernel / matching channels expected"
    SD = style.shape[-1]
    S = H * W
    pad = KH // 2
    P = pad * W + pad
    conv_scale = 1.0 / math.sqrt(C * KH * KW)
    mod_scale = 1.0 / math.sqrt(SD) * lr_mul

    # Metadata-only reshapes: lane-dense H*W last dim, no padding copies.
    x2 = x.reshape(B, C, S)
    style3 = style.reshape(B, 1, SD)
    w_taps = conv_weight.reshape(OC, C, KH * KW).transpose(2, 0, 1)    # (KK, OC, C)
    modb2 = (mod_bias * lr_mul).reshape(C, 1)

    kernel = functools.partial(
        _modconv_kernel, H=H, W=W, KH=KH, KW=KW, pad=pad,
        conv_scale=conv_scale, mod_scale=mod_scale, eps=eps,
        demodulate=demodulate)

    out = pl.pallas_call(
        kernel,
        out_shape=jax.ShapeDtypeStruct((B, OC, S), x.dtype),
        grid_spec=pltpu.PrefetchScalarGridSpec(
            num_scalar_prefetch=0,
            grid=(B,),
            in_specs=[
                pl.BlockSpec((1, C, S), lambda b: (b, 0, 0)),            # x (lane-dense)
                pl.BlockSpec((1, 1, SD), lambda b: (b, 0, 0)),           # style
                pl.BlockSpec((C, SD), lambda b: (0, 0)),                 # modulation W
                pl.BlockSpec((C, 1), lambda b: (0, 0)),                  # modulation b
                pl.BlockSpec((KH * KW, OC, C), lambda b: (0, 0, 0)),     # conv weight
            ],
            out_specs=pl.BlockSpec((1, OC, S), lambda b: (b, 0, 0)),
            scratch_shapes=[pltpu.VMEM((C, S + 2 * P), jnp.float32)],    # padded row
        ),
        compiler_params=pltpu.CompilerParams(
            dimension_semantics=("parallel",),
        ),
    )(x2, style3, mod_weight, modb2, w_taps)

    return out.reshape(B, OC, H, W)


if __name__ == "__main__":
    B, C, OC, K, SD, H, W = 2, 4, 8, 3, 8, 16, 16
    key = jax.random.PRNGKey(0)
    kx, ks, kw, km = jax.random.split(key, 4)
    x = jax.random.normal(kx, (B, C, H, W), dtype=jnp.float32)
    style = jax.random.normal(ks, (B, SD), dtype=jnp.float32)
    conv_w = jax.random.normal(kw, (OC, C, K, K), dtype=jnp.float32)   # module.weight[0]
    mod_w = jax.random.normal(km, (C, SD), dtype=jnp.float32)          # EqualLinear weight
    mod_b = jnp.ones((C,), dtype=jnp.float32)                          # bias_init=1

    y = modulated_conv2d(x, style, conv_w, mod_w, mod_b, demodulate=True)
    y = jax.block_until_ready(y)
    assert y.shape == (B, OC, H, W) and y.dtype == x.dtype

    # ---- pure-JAX reference of the same forward (new_demodulation path) ----
    mod_scale = 1.0 / math.sqrt(SD)
    conv_scale = 1.0 / math.sqrt(C * K * K)
    s = style @ (mod_w * mod_scale).T + mod_b                           # (B, C)
    s = s * jax.lax.rsqrt(jnp.mean(s * s, axis=1, keepdims=True) + 1e-8)
    x_mod = x * s[:, :, None, None]
    wsc = conv_scale * conv_w
    dem = jax.lax.rsqrt(jnp.sum(wsc * wsc, axis=(1, 2, 3)) + 1e-8)      # (OC,)
    w_d = wsc * dem[:, None, None, None]
    p = K // 2
    ref = jax.lax.conv_general_dilated(
        x_mod, w_d, window_strides=(1, 1), padding=((p, p), (p, p)),
        dimension_numbers=("NCHW", "OIHW", "NCHW"),
        precision=jax.lax.Precision.HIGHEST)

    assert jnp.allclose(y, ref, atol=2e-4, rtol=2e-4), float(jnp.max(jnp.abs(y - ref)))
    print("KERNEL_OK")
</pallas_src>

<mosaic_0001>
module attributes {stable_mosaic.version = 11 : i64} {
  func.func @_modconv_kernel(%arg0: i32, %arg1: memref<1x4x256xf32, #tpu.memory_space<vmem>>, %arg2: memref<1x1x8xf32, #tpu.memory_space<vmem>>, %arg3: memref<4x8xf32, #tpu.memory_space<vmem>>, %arg4: memref<4x1xf32, #tpu.memory_space<vmem>>, %arg5: memref<9x8x4xf32, #tpu.memory_space<vmem>>, %arg6: memref<1x8x256xf32, #tpu.memory_space<vmem>>, %arg7: memref<4x290xf32, #tpu.memory_space<vmem>>) attributes {dimension_semantics = [#tpu.dimension_semantics<parallel>], iteration_bounds = array<i64: 2>, scalar_prefetch = 0 : i64, scratch_operands = 1 : i64, tpu.core_type = #tpu.core_type<tc>, window_params = [{transform_indices = @transform_0, window_bounds = array<i64: 1, 4, 256>}, {transform_indices = @transform_1, window_bounds = array<i64: 1, 1, 8>}, {pipeline_mode = #tpu.pipeline_mode<synchronous>, transform_indices = @transform_2, window_bounds = array<i64: 4, 8>}, {pipeline_mode = #tpu.pipeline_mode<synchronous>, transform_indices = @transform_3, window_bounds = array<i64: 4, 1>}, {pipeline_mode = #tpu.pipeline_mode<synchronous>, transform_indices = @transform_4, window_bounds = array<i64: 9, 8, 4>}, {transform_indices = @transform_5, window_bounds = array<i64: 1, 8, 256>}]} {
    %c0 = arith.constant 0 : index
    %c0_0 = arith.constant 0 : index
    %c0_1 = arith.constant 0 : index
    %0 = vector.load %arg2[%c0, %c0_0, %c0_1] : memref<1x1x8xf32, #tpu.memory_space<vmem>>, vector<1x1x8xf32>
    %1 = vector.shape_cast %0 : vector<1x1x8xf32> to vector<1x8xf32>
    %c0_2 = arith.constant 0 : index
    %c0_3 = arith.constant 0 : index
    %2 = vector.load %arg3[%c0_2, %c0_3] : memref<4x8xf32, #tpu.memory_space<vmem>>, vector<4x8xf32>
    %3 = vector.broadcast %1 : vector<1x8xf32> to vector<4x8xf32>
    %4 = arith.mulf %2, %3 : vector<4x8xf32>
    %cst = arith.constant dense<0.000000e+00> : vector<4xf32>
    %5 = vector.multi_reduction <add>, %4, %cst [1] : vector<4x8xf32> to vector<4xf32>
    %6 = vector.shape_cast %5 : vector<4xf32> to vector<4x1xf32>
    %cst_4 = arith.constant 0.353553385 : f32
    %7 = vector.broadcast %cst_4 : f32 to vector<4x1xf32>
    %8 = arith.mulf %6, %7 : vector<4x1xf32>
    %c0_5 = arith.constant 0 : index
    %c0_6 = arith.constant 0 : index
    %9 = vector.load %arg4[%c0_5, %c0_6] : memref<4x1xf32, #tpu.memory_space<vmem>>, vector<4x1xf32>
    %10 = arith.addf %8, %9 : vector<4x1xf32>
    %11 = arith.mulf %10, %10 : vector<4x1xf32>
    %cst_7 = arith.constant dense<0.000000e+00> : vector<1xf32>
    %12 = vector.multi_reduction <add>, %11, %cst_7 [0] : vector<4x1xf32> to vector<1xf32>
    %13 = vector.shape_cast %12 : vector<1xf32> to vector<1x1xf32>
    %cst_8 = arith.constant 4.000000e+00 : f32
    %14 = vector.broadcast %cst_8 : f32 to vector<1x1xf32>
    %15 = arith.divf %13, %14 : vector<1x1xf32>
    %cst_9 = arith.constant 9.99999993E-9 : f32
    %16 = vector.broadcast %cst_9 : f32 to vector<1x1xf32>
    %17 = arith.addf %15, %16 : vector<1x1xf32>
    %18 = math.rsqrt %17 : vector<1x1xf32>
    %19 = vector.broadcast %18 : vector<1x1xf32> to vector<4x1xf32>
    %20 = arith.mulf %10, %19 : vector<4x1xf32>
    %c0_10 = arith.constant 0 : index
    %c0_11 = arith.constant 0 : index
    %c0_12 = arith.constant 0 : index
    %21 = vector.load %arg1[%c0_10, %c0_11, %c0_12] : memref<1x4x256xf32, #tpu.memory_space<vmem>>, vector<1x4x256xf32>
    %22 = vector.shape_cast %21 : vector<1x4x256xf32> to vector<4x256xf32>
    %23 = vector.broadcast %20 : vector<4x1xf32> to vector<4x256xf32>
    %24 = arith.mulf %22, %23 : vector<4x256xf32>
    %cst_13 = arith.constant 0.000000e+00 : f32
    %25 = vector.broadcast %cst_13 : f32 to vector<4x290xf32>
    %c0_14 = arith.constant 0 : index
    %c0_15 = arith.constant 0 : index
    %26 = vector.load %arg7[%c0_14, %c0_15] : memref<4x290xf32, #tpu.memory_space<vmem>>, vector<4x290xf32>
    tpu.vector_store %arg7[%c0_14, %c0_15], %25 {strides = array<i32>} : memref<4x290xf32, #tpu.memory_space<vmem>>, vector<4x290xf32>,
    %c0_16 = arith.constant 0 : index
    %c17 = arith.constant 17 : index
    %27 = vector.load %arg7[%c0_16, %c17] : memref<4x290xf32, #tpu.memory_space<vmem>>, vector<4x256xf32>
    tpu.vector_store %arg7[%c0_16, %c17], %24 {strides = array<i32>} : memref<4x290xf32, #tpu.memory_space<vmem>>, vector<4x256xf32>,
    %c0_17 = arith.constant 0 : index
    %c0_18 = arith.constant 0 : index
    %c0_19 = arith.constant 0 : index
    %28 = vector.load %arg5[%c0_17, %c0_18, %c0_19] : memref<9x8x4xf32, #tpu.memory_space<vmem>>, vector<9x8x4xf32>
    %cst_20 = arith.constant 0.166666672 : f32
    %29 = vector.broadcast %cst_20 : f32 to vector<9x8x4xf32>
    %30 = arith.mulf %28, %29 : vector<9x8x4xf32>
    %31 = arith.mulf %30, %30 : vector<9x8x4xf32>
    %cst_21 = arith.constant dense<0.000000e+00> : vector<9x8xf32>
    %32 = vector.multi_reduction <add>, %31, %cst_21 [2] : vector<9x8x4xf32> to vector<9x8xf32>
    %33 = vector.shape_cast %32 : vector<9x8xf32> to vector<9x8x1xf32>
    %cst_22 = arith.constant dense<0.000000e+00> : vector<8x1xf32>
    %34 = vector.multi_reduction <add>, %33, %cst_22 [0] : vector<9x8x1xf32> to vector<8x1xf32>
    %cst_23 = arith.constant 9.99999993E-9 : f32
    %35 = vector.broadcast %cst_23 : f32 to vector<8x1xf32>
    %36 = arith.addf %34, %35 : vector<8x1xf32>
    %37 = math.rsqrt %36 : vector<8x1xf32>
    %38 = tpu.iota {dimensions = array<i32: 1>} : vector<1x256xi32>
    %c16_i32 = arith.constant 16 : i32
    %c0_i32 = arith.constant 0 : i32
    %39 = arith.cmpi eq, %c16_i32, %c0_i32 : i32
    %c1_i32 = arith.constant 1 : i32
    %40 = arith.select %39, %c1_i32, %c16_i32 : i32
    %41 = vector.broadcast %40 : i32 to vector<1x256xi32>
    %42 = arith.remsi %38, %41 : vector<1x256xi32>
    %c0_i32_24 = arith.constant 0 : i32
    %43 = vector.broadcast %c0_i32_24 : i32 to vector<1x256xi32>
    %44 = arith.cmpi ne, %42, %43 : vector<1x256xi32>
    %c0_i32_25 = arith.constant 0 : i32
    %45 = vector.broadcast %c0_i32_25 : i32 to vector<1x256xi32>
    %46 = arith.cmpi slt, %42, %45 : vector<1x256xi32>
    %c0_i32_26 = arith.constant 0 : i32
    %47 = arith.cmpi slt, %40, %c0_i32_26 : i32
    %48 = vector.broadcast %47 : i1 to vector<1x256xi1>
    %49 = vector.broadcast %48 : vector<1x256xi1> to vector<1x256xi1>
    %50 = arith.xori %46, %49 : vector<1x256xi1>
    %51 = arith.andi %50, %44 : vector<1x256xi1>
    %52 = vector.broadcast %40 : i32 to vector<1x256xi32>
    %53 = arith.addi %42, %52 : vector<1x256xi32>
    %54 = arith.select %51, %53, %42 : vector<1x256xi1>, vector<1x256xi32>
    %cst_27 = arith.constant 0.000000e+00 : f32
    %55 = vector.broadcast %cst_27 : f32 to vector<8x256xf32>
    %c0_28 = arith.constant 0 : index
    %c0_29 = arith.constant 0 : index
    %56 = vector.load %arg7[%c0_28, %c0_29] : memref<4x290xf32, #tpu.memory_space<vmem>>, vector<4x256xf32>
    %c1_i32_30 = arith.constant 1 : i32
    %57 = vector.broadcast %c1_i32_30 : i32 to vector<1x256xi32>
    %58 = arith.cmpi sge, %54, %57 : vector<1x256xi32>
    %cst_31 = arith.constant 0.000000e+00 : f32
    %59 = vector.shape_cast %58 : vector<1x256xi1> to vector<1x256xi1>
    %60 = vector.broadcast %59 : vector<1x256xi1> to vector<4x256xi1>
    %61 = vector.broadcast %cst_31 : f32 to vector<4x256xf32>
    %62 = arith.select %60, %56, %61 : vector<4x256xi1>, vector<4x256xf32>
    %63 = vector.extract_strided_slice %30 {offsets = [0, 0, 0], sizes = [1, 8, 4], strides = [1, 1, 1]} : vector<9x8x4xf32> to vector<1x8x4xf32>
    %64 = vector.shape_cast %63 : vector<1x8x4xf32> to vector<8x4xf32>
    %65 = vector.broadcast %37 : vector<8x1xf32> to vector<8x4xf32>
    %66 = arith.mulf %64, %65 : vector<8x4xf32>
    %cst_32 = arith.constant dense<0.000000e+00> : vector<8x256xf32>
    %67 = tpu.matmul %66, %62, %cst_32 {dimension_numbers = #tpu.dot_dimension_numbers<[1], [0], [0], [1], [0, 0, 1, 1], [], []>} : vector<8x4xf32>, vector<4x256xf32>, vector<8x256xf32> -> vector<8x256xf32>
    %68 = arith.addf %55, %67 : vector<8x256xf32>
    %c0_33 = arith.constant 0 : index
    %c1 = arith.constant 1 : index
    %69 = vector.load %arg7[%c0_33, %c1] : memref<4x290xf32, #tpu.memory_space<vmem>>, vector<4x256xf32>
    %70 = vector.extract_strided_slice %30 {offsets = [1, 0, 0], sizes = [1, 8, 4], strides = [1, 1, 1]} : vector<9x8x4xf32> to vector<1x8x4xf32>
    %71 = vector.shape_cast %70 : vector<1x8x4xf32> to vector<8x4xf32>
    %72 = vector.broadcast %37 : vector<8x1xf32> to vector<8x4xf32>
    %73 = arith.mulf %71, %72 : vector<8x4xf32>
    %cst_34 = arith.constant dense<0.000000e+00> : vector<8x256xf32>
    %74 = tpu.matmul %73, %69, %cst_34 {dimension_numbers = #tpu.dot_dimension_numbers<[1], [0], [0], [1], [0, 0, 1, 1], [], []>} : vector<8x4xf32>, vector<4x256xf32>, vector<8x256xf32> -> vector<8x256xf32>
    %75 = arith.addf %68, %74 : vector<8x256xf32>
    %c0_35 = arith.constant 0 : index
    %c2 = arith.constant 2 : index
    %76 = vector.load %arg7[%c0_35, %c2] : memref<4x290xf32, #tpu.memory_space<vmem>>, vector<4x256xf32>
    %c15_i32 = arith.constant 15 : i32
    %77 = vector.broadcast %c15_i32 : i32 to vector<1x256xi32>
    %78 = arith.cmpi slt, %54, %77 : vector<1x256xi32>
    %cst_36 = arith.constant 0.000000e+00 : f32
    %79 = vector.shape_cast %78 : vector<1x256xi1> to vector<1x256xi1>
    %80 = vector.broadcast %79 : vector<1x256xi1> to vector<4x256xi1>
    %81 = vector.broadcast %cst_36 : f32 to vector<4x256xf32>
    %82 = arith.select %80, %76, %81 : vector<4x256xi1>, vector<4x256xf32>
    %83 = vector.extract_strided_slice %30 {offsets = [2, 0, 0], sizes = [1, 8, 4], strides = [1, 1, 1]} : vector<9x8x4xf32> to vector<1x8x4xf32>
    %84 = vector.shape_cast %83 : vector<1x8x4xf32> to vector<8x4xf32>
    %85 = vector.broadcast %37 : vector<8x1xf32> to vector<8x4xf32>
    %86 = arith.mulf %84, %85 : vector<8x4xf32>
    %cst_37 = arith.constant dense<0.000000e+00> : vector<8x256xf32>
    %87 = tpu.matmul %86, %82, %cst_37 {dimension_numbers = #tpu.dot_dimension_numbers<[1], [0], [0], [1], [0, 0, 1, 1], [], []>} : vector<8x4xf32>, vector<4x256xf32>, vector<8x256xf32> -> vector<8x256xf32>
    %88 = arith.addf %75, %87 : vector<8x256xf32>
    %c0_38 = arith.constant 0 : index
    %c16 = arith.constant 16 : index
    %89 = vector.load %arg7[%c0_38, %c16] : memref<4x290xf32, #tpu.memory_space<vmem>>, vector<4x256xf32>
    %c1_i32_39 = arith.constant 1 : i32
    %90 = vector.broadcast %c1_i32_39 : i32 to vector<1x256xi32>
    %91 = arith.cmpi sge, %54, %90 : vector<1x256xi32>
    %cst_40 = arith.constant 0.000000e+00 : f32
    %92 = vector.shape_cast %91 : vector<1x256xi1> to vector<1x256xi1>
    %93 = vector.broadcast %92 : vector<1x256xi1> to vector<4x256xi1>
    %94 = vector.broadcast %cst_40 : f32 to vector<4x256xf32>
    %95 = arith.select %93, %89, %94 : vector<4x256xi1>, vector<4x256xf32>
    %96 = vector.extract_strided_slice %30 {offsets = [3, 0, 0], sizes = [1, 8, 4], strides = [1, 1, 1]} : vector<9x8x4xf32> to vector<1x8x4xf32>
    %97 = vector.shape_cast %96 : vector<1x8x4xf32> to vector<8x4xf32>
    %98 = vector.broadcast %37 : vector<8x1xf32> to vector<8x4xf32>
    %99 = arith.mulf %97, %98 : vector<8x4xf32>
    %cst_41 = arith.constant dense<0.000000e+00> : vector<8x256xf32>
    %100 = tpu.matmul %99, %95, %cst_41 {dimension_numbers = #tpu.dot_dimension_numbers<[1], [0], [0], [1], [0, 0, 1, 1], [], []>} : vector<8x4xf32>, vector<4x256xf32>, vector<8x256xf32> -> vector<8x256xf32>
    %101 = arith.addf %88, %100 : vector<8x256xf32>
    %c0_42 = arith.constant 0 : index
    %c17_43 = arith.constant 17 : index
    %102 = vector.load %arg7[%c0_42, %c17_43] : memref<4x290xf32, #tpu.memory_space<vmem>>, vector<4x256xf32>
    %103 = vector.extract_strided_slice %30 {offsets = [4, 0, 0], sizes = [1, 8, 4], strides = [1, 1, 1]} : vector<9x8x4xf32> to vector<1x8x4xf32>
    %104 = vector.shape_cast %103 : vector<1x8x4xf32> to vector<8x4xf32>
    %105 = vector.broadcast %37 : vector<8x1xf32> to vector<8x4xf32>
    %106 = arith.mulf %104, %105 : vector<8x4xf32>
    %cst_44 = arith.constant dense<0.000000e+00> : vector<8x256xf32>
    %107 = tpu.matmul %106, %102, %cst_44 {dimension_numbers = #tpu.dot_dimension_numbers<[1], [0], [0], [1], [0, 0, 1, 1], [], []>} : vector<8x4xf32>, vector<4x256xf32>, vector<8x256xf32> -> vector<8x256xf32>
    %108 = arith.addf %101, %107 : vector<8x256xf32>
    %c0_45 = arith.constant 0 : index
    %c18 = arith.constant 18 : index
    %109 = vector.load %arg7[%c0_45, %c18] : memref<4x290xf32, #tpu.memory_space<vmem>>, vector<4x256xf32>
    %c15_i32_46 = arith.constant 15 : i32
    %110 = vector.broadcast %c15_i32_46 : i32 to vector<1x256xi32>
    %111 = arith.cmpi slt, %54, %110 : vector<1x256xi32>
    %cst_47 = arith.constant 0.000000e+00 : f32
    %112 = vector.shape_cast %111 : vector<1x256xi1> to vector<1x256xi1>
    %113 = vector.broadcast %112 : vector<1x256xi1> to vector<4x256xi1>
    %114 = vector.broadcast %cst_47 : f32 to vector<4x256xf32>
    %115 = arith.select %113, %109, %114 : vector<4x256xi1>, vector<4x256xf32>
    %116 = vector.extract_strided_slice %30 {offsets = [5, 0, 0], sizes = [1, 8, 4], strides = [1, 1, 1]} : vector<9x8x4xf32> to vector<1x8x4xf32>
    %117 = vector.shape_cast %116 : vector<1x8x4xf32> to vector<8x4xf32>
    %118 = vector.broadcast %37 : vector<8x1xf32> to vector<8x4xf32>
    %119 = arith.mulf %117, %118 : vector<8x4xf32>
    %cst_48 = arith.constant dense<0.000000e+00> : vector<8x256xf32>
    %120 = tpu.matmul %119, %115, %cst_48 {dimension_numbers = #tpu.dot_dimension_numbers<[1], [0], [0], [1], [0, 0, 1, 1], [], []>} : vector<8x4xf32>, vector<4x256xf32>, vector<8x256xf32> -> vector<8x256xf32>
    %121 = arith.addf %108, %120 : vector<8x256xf32>
    %c0_49 = arith.constant 0 : index
    %c32 = arith.constant 32 : index
    %122 = vector.load %arg7[%c0_49, %c32] : memref<4x290xf32, #tpu.memory_space<vmem>>, vector<4x256xf32>
    %c1_i32_50 = arith.constant 1 : i32
    %123 = vector.broadcast %c1_i32_50 : i32 to vector<1x256xi32>
    %124 = arith.cmpi sge, %54, %123 : vector<1x256xi32>
    %cst_51 = arith.constant 0.000000e+00 : f32
    %125 = vector.shape_cast %124 : vector<1x256xi1> to vector<1x256xi1>
    %126 = vector.broadcast %125 : vector<1x256xi1> to vector<4x256xi1>
    %127 = vector.broadcast %cst_51 : f32 to vector<4x256xf32>
    %128 = arith.select %126, %122, %127 : vector<4x256xi1>, vector<4x256xf32>
    %129 = vector.extract_strided_slice %30 {offsets = [6, 0, 0], sizes = [1, 8, 4], strides = [1, 1, 1]} : vector<9x8x4xf32> to vector<1x8x4xf32>
    %130 = vector.shape_cast %129 : vector<1x8x4xf32> to vector<8x4xf32>
    %131 = vector.broadcast %37 : vector<8x1xf32> to vector<8x4xf32>
    %132 = arith.mulf %130, %131 : vector<8x4xf32>
    %cst_52 = arith.constant dense<0.000000e+00> : vector<8x256xf32>
    %133 = tpu.matmul %132, %128, %cst_52 {dimension_numbers = #tpu.dot_dimension_numbers<[1], [0], [0], [1], [0, 0, 1, 1], [], []>} : vector<8x4xf32>, vector<4x256xf32>, vector<8x256xf32> -> vector<8x256xf32>
    %134 = arith.addf %121, %133 : vector<8x256xf32>
    %c0_53 = arith.constant 0 : index
    %c33 = arith.constant 33 : index
    %135 = vector.load %arg7[%c0_53, %c33] : memref<4x290xf32, #tpu.memory_space<vmem>>, vector<4x256xf32>
    %136 = vector.extract_strided_slice %30 {offsets = [7, 0, 0], sizes = [1, 8, 4], strides = [1, 1, 1]} : vector<9x8x4xf32> to vector<1x8x4xf32>
    %137 = vector.shape_cast %136 : vector<1x8x4xf32> to vector<8x4xf32>
    %138 = vector.broadcast %37 : vector<8x1xf32> to vector<8x4xf32>
    %139 = arith.mulf %137, %138 : vector<8x4xf32>
    %cst_54 = arith.constant dense<0.000000e+00> : vector<8x256xf32>
    %140 = tpu.matmul %139, %135, %cst_54 {dimension_numbers = #tpu.dot_dimension_numbers<[1], [0], [0], [1], [0, 0, 1, 1], [], []>} : vector<8x4xf32>, vector<4x256xf32>, vector<8x256xf32> -> vector<8x256xf32>
    %141 = arith.addf %134, %140 : vector<8x256xf32>
    %c0_55 = arith.constant 0 : index
    %c34 = arith.constant 34 : index
    %142 = vector.load %arg7[%c0_55, %c34] : memref<4x290xf32, #tpu.memory_space<vmem>>, vector<4x256xf32>
    %c15_i32_56 = arith.constant 15 : i32
    %143 = vector.broadcast %c15_i32_56 : i32 to vector<1x256xi32>
    %144 = arith.cmpi slt, %54, %143 : vector<1x256xi32>
    %cst_57 = arith.constant 0.000000e+00 : f32
    %145 = vector.shape_cast %144 : vector<1x256xi1> to vector<1x256xi1>
    %146 = vector.broadcast %145 : vector<1x256xi1> to vector<4x256xi1>
    %147 = vector.broadcast %cst_57 : f32 to vector<4x256xf32>
    %148 = arith.select %146, %142, %147 : vector<4x256xi1>, vector<4x256xf32>
    %149 = vector.extract_strided_slice %30 {offsets = [8, 0, 0], sizes = [1, 8, 4], strides = [1, 1, 1]} : vector<9x8x4xf32> to vector<1x8x4xf32>
    %150 = vector.shape_cast %149 : vector<1x8x4xf32> to vector<8x4xf32>
    %151 = vector.broadcast %37 : vector<8x1xf32> to vector<8x4xf32>
    %152 = arith.mulf %150, %151 : vector<8x4xf32>
    %cst_58 = arith.constant dense<0.000000e+00> : vector<8x256xf32>
    %153 = tpu.matmul %152, %148, %cst_58 {dimension_numbers = #tpu.dot_dimension_numbers<[1], [0], [0], [1], [0, 0, 1, 1], [], []>} : vector<8x4xf32>, vector<4x256xf32>, vector<8x256xf32> -> vector<8x256xf32>
    %154 = arith.addf %141, %153 : vector<8x256xf32>
    %c0_59 = arith.constant 0 : index
    %c0_60 = arith.constant 0 : index
    %c0_61 = arith.constant 0 : index
    %155 = vector.load %arg6[%c0_59, %c0_60, %c0_61] : memref<1x8x256xf32, #tpu.memory_space<vmem>>, vector<1x8x256xf32>
    %156 = vector.shape_cast %155 : vector<1x8x256xf32> to vector<8x256xf32>
    %157 = vector.shape_cast %154 : vector<8x256xf32> to vector<1x8x256xf32>
    tpu.vector_store %arg6[%c0_59, %c0_60, %c0_61], %157 {strides = array<i32>} : memref<1x8x256xf32, #tpu.memory_space<vmem>>, vector<1x8x256xf32>,
    return
  }
  func.func @transform_0(%arg0: i32) -> (i32, i32, i32) {
    %c0_i32 = arith.constant 0 : i32
    %c0_i32_0 = arith.constant 0 : i32
    %c0_i32_1 = arith.constant 0 : i32
    return %arg0, %c0_i32, %c0_i32_0 : i32, i32, i32
  }
  func.func @transform_1(%arg0: i32) -> (i32, i32, i32) {
    %c0_i32 = arith.constant 0 : i32
    %c0_i32_0 = arith.constant 0 : i32
    %c0_i32_1 = arith.constant 0 : i32
    return %arg0, %c0_i32, %c0_i32_0 : i32, i32, i32
  }
  func.func @transform_2(%arg0: i32) -> (i32, i32) {
    %c0_i32 = arith.constant 0 : i32
    %c0_i32_0 = arith.constant 0 : i32
    %c0_i32_1 = arith.constant 0 : i32
    return %c0_i32, %c0_i32_0 : i32, i32
  }
  func.func @transform_3(%arg0: i32) -> (i32, i32) {
    %c0_i32 = arith.constant 0 : i32
    %c0_i32_0 = arith.constant 0 : i32
    %c0_i32_1 = arith.constant 0 : i32
    return %c0_i32, %c0_i32_0 : i32, i32
  }
  func.func @transform_4(%arg0: i32) -> (i32, i32, i32) {
    %c0_i32 = arith.constant 0 : i32
    %c0_i32_0 = arith.constant 0 : i32
    %c0_i32_1 = arith.constant 0 : i32
    %c0_i32_2 = arith.constant 0 : i32
    return %c0_i32, %c0_i32_0, %c0_i32_1 : i32, i32, i32
  }
  func.func @transform_5(%arg0: i32) -> (i32, i32, i32) {
    %c0_i32 = arith.constant 0 : i32
    %c0_i32_0 = arith.constant 0 : i32
    %c0_i32_1 = arith.constant 0 : i32
    return %arg0, %c0_i32, %c0_i32_0 : i32, i32, i32
  }
}

</mosaic_0001>

<bundles_post_ra>
// kernel: tpu_custom_call.1
= control target key start
LH: loop header
LB: loop body
LE: loop exit
PB: predicated region body
PF: predicated region fallthrough
CT: control target
= control target key end

     0   :  { %10 = vsyncpa [#allocation4], 0  ;;  %s1932_s0 = inlined_call_operand.vmem [shape: f32[2,4,256], index: 0, kind: input, shape index: {}]   ;;  %s1933_s1 = inlined_call_operand.vmem [shape: f32[2,1,8], index: 1, kind: input, shape index: {}]   ;;  %s1934_s2 = inlined_call_operand.vmem [shape: f32[4,8], index: 2, kind: input, shape index: {}]   ;;  %s1935_s3 = inlined_call_operand.vmem [shape: f32[4,1], index: 3, kind: input, shape index: {}]   ;;  %s1936_s4 = inlined_call_operand.vmem [shape: f32[9,8,4], index: 4, kind: input, shape index: {}]   ;;  %s1937_s5 = inlined_call_operand.hbm [shape: f32[2,8,256], index: 5, kind: output, shape index: {}]  }
   0x1   :  { %12 = vsyncpa [#allocation4 + $0x1], 0  ;;  %s1582_s18 = smov 0   ;;  %s1584_s19 = smov 0  }
   0x2   :  { %s1586_s20 = smov 0   ;;  %s1588_s21 = smov 0  }
   0x3 LB: > { %s1603_s22 = sadd.s32 4294967295, %s1537_s21   ;;  %s1360_s23 = sadd.s32 4294967294, %s1537_s21   ;;  %s1537_s21 = sphi %s1588_s21, %s1951_s21   ;;  %s1533_s20 = sphi %s1586_s20, %s1950_s20   ;;  %s1529_s19 = sphi %s1584_s19, %s1949_s19   ;;  %s1525_s18 = sphi %s1582_s18, %s1948_s18  }
   0x4   : > { %s1607_s24 = sadd.s32 1, %s1537_s21   ;;  %s140_s25 = sadd.s32 1, %s1533_s20 }
   0x5   : > { %s137_s26 = ssub.s32 %s1537_s21, %s1607_s24  ;;  %p150_p0 = scmp.ne.s32.totalorder %s1533_s20, %s1529_s19 }
   0x6   : > { %p138_p1 = scmp.eq.s32.totalorder %s137_s26, 0  ;;  %p151_p2 = scmp.eq.s32.totalorder %s1603_s22, 1 }
   0x7   : > { %p156_p3 = scmp.ne.s32.totalorder %s1529_s19, %s1525_s18  ;;  %p157_p4 = scmp.eq.s32.totalorder %s1360_s23, 1 }
   0x8   : > { %s1618_s27 = scalar_select %p138_p1, %s1533_s20, %s140_s25  }
   0x9   : > { %p1620_p5 = por %p151_p2, %p150_p0  ;;  %p1624_p6 = por %p157_p4, %p156_p3 }
   0xa   : > { %p1363_p7 = scmp.ge.s32.totalorder %s1537_s21, 1  ;;  %p198_p8 = scmp.lt.s32.totalorder %s1537_s21, 3 }
   0xc   : > { %p199_p9 = pnand %p1363_p7, %p198_p8 }
   0xd   : > { %p229_p10 = scmp.lt.s32.totalorder (!%p199_p9), %s1603_s22, 1  ;;  %v238_v0 = vld [vmem:[%s1934_s2] sm:$0xf] (!%p199_p9)  ;;  %vm246_vm0 = vcmask (!%p199_p9), 60416   ;;  %v1539_v4 = vmov (!%p199_p9), 0   ;;  %v299_v6 = vld [vmem:[%s1936_s4 + $0x8] sm:$0xff] (!%p199_p9)  ;;  %v275_v61 = vlaneseq (!%p199_p9) }
   0xe   : > { %202 = sbr.rel (%p199_p9) target bundleno = 863 (0x35f), region = 40  ;;  %1469 = vset.pattern.permute.xlu0 (!%p199_p9), %v1539_v4  ;;  %v298_v5 = vld [vmem:[%s1936_s4] sm:$0xff] (!%p199_p9)  ;;  %v300_v7 = vld [vmem:[%s1936_s4 + $0x10] sm:$0xff] (!%p199_p9)  ;;  %v1652_v9 = vmul.f32 (!%p199_p9), 0.16666667, %v299_v6  ;;  %vm325_vm1 = vcmask (!%p199_p9), 31744  }
   0xf   : > { %v1650_v8 = vmul.f32 (!%p199_p9), 0.16666667, %v298_v5  ;;  %v1658_v12 = vmul.f32 (!%p199_p9), 0.16666667, %v300_v7  ;;  %v302_v13 = vld [vmem:[%s1936_s4 + $0x20] sm:$0xff] (!%p199_p9)  ;;  %v303_v18 = vld [vmem:[%s1936_s4 + $0x28] sm:$0xff] (!%p199_p9) }
  0x10   : > { %v317_v11 = vmul.f32 (!%p199_p9), %v1652_v9, %v1652_v9  ;;  %v1667_v17 = vmul.f32 (!%p199_p9), 0.16666667, %v302_v13  ;;  %v1675_v21 = vmul.f32 (!%p199_p9), 0.16666667, %v303_v18  ;;  %v304_v25 = vld [vmem:[%s1936_s4 + $0x30] sm:$0xff] (!%p199_p9)  ;;  %v305_v26 = vld [vmem:[%s1936_s4 + $0x38] sm:$0xff] (!%p199_p9) }
  0x11   : > { %v316_v10 = vmul.f32 (!%p199_p9), %v1650_v8, %v1650_v8  ;;  %v318_v16 = vmul.f32 (!%p199_p9), %v1658_v12, %v1658_v12  ;;  %v1687_v27 = vmul.f32 (!%p199_p9), 0.16666667, %v304_v25  ;;  %v1689_v28 = vmul.f32 (!%p199_p9), 0.16666667, %v305_v26  ;;  %v251_v33 = vld [vmem:[%s1935_s3] sm:$0xf] (!%p199_p9) }
  0x12   : > { %v329_v15 = vsel (!%p199_p9), %vm325_vm1, %v317_v11, 0.0  ;;  %v320_v20 = vmul.f32 (!%p199_p9), %v1667_v17, %v1667_v17  ;;  %v321_v23 = vmul.f32 (!%p199_p9), %v1675_v21, %v1675_v21  ;;  %vm254_vm2 = vcmask (!%p199_p9), 3072   ;;  %v301_v49 = vld [vmem:[%s1936_s4 + $0x18] sm:$0xff] (!%p199_p9)  ;;  %s1542_s23 = smov (!%p199_p9), 17   ;;  %v306_v5 = vld [vmem:[%s1936_s4 + $0x40] sm:$0xff] (!%p199_p9)  ;;  %s1544_s6 = smov (!%p199_p9), 111  }
  0x13   : > { %v326_v14 = vsel (!%p199_p9), %vm325_vm1, %v316_v10, 0.0  ;;  %v332_v19 = vsel (!%p199_p9), %vm325_vm1, %v318_v16, 0.0  ;;  %v322_v29 = vmul.f32 (!%p199_p9), %v1687_v27, %v1687_v27  ;;  %v323_v30 = vmul.f32 (!%p199_p9), %v1689_v28, %v1689_v28  ;;  %s1545_s7 = smov (!%p199_p9), 126   ;;  %s1546_s8 = smov (!%p199_p9), 127  }
  0x14   : > { %327 = vadd.xlane.f32.xlu1 (!%p199_p9), %v326_v14  ;;  %v338_v22 = vsel (!%p199_p9), %vm325_vm1, %v320_v20, 0.0  ;;  %v341_v24 = vsel (!%p199_p9), %vm325_vm1, %v321_v23, 0.0  ;;  %v1703_v50 = vmul.f32 (!%p199_p9), 0.16666667, %v301_v49  ;;  %vm282_vm3 = vcmask (!%p199_p9), 273408   ;;  %s1547_s9 = smov (!%p199_p9), 96  }
  0x15   : > { %s1632_s30 = scalar_select %p229_p10, %s1603_s22, 1  ;;  %v344_v31 = vsel %vm325_vm1, %v322_v29, 0.0  ;;  %v347_v32 = vsel %vm325_vm1, %v323_v30, 0.0  ;;  %v1540_v58 = vmov 0.0   ;;  %v1541_v59 = vmov 839922192  }
  0x16   : > { %v319_v51 = vmul.f32 %v1703_v50, %v1703_v50  ;;  %281 = vst [vmem:[#allocation2] sm:$0xff] %v1540_v58  ;;  %283 = vst.msk [vmem:[#allocation2 + $0x8] sm:$0xf] %vm282_vm3, %v1540_v58  ;;  %868 = vmatprep.mubr.f32.mxu0 %v1540_v58  ;;  %487 = vmatprep.mubr.f32.mxu1 %v1540_v58  ;;  %v273_v60 = vunpack.c.l.s4 %v1541_v59  ;;  %v276_v63 = vshrl.u32 %v275_v61, 7  ;;  %v1721_v6 = vmul.f32 0.16666667, %v306_v5 }
  0x17   : > { %s236_s10 = scalar_lea.vmem %s1933_s1, %s1632_s30  ;;  %s1400_s14 = sshll.u32 %s1632_s30, 3  ;;  %vm292_vm4 = vcmask 1043592   ;;  %vm293_vm5 = vcmask 1047556   ;;  %v1734_v16 = vand.u32 127, %v275_v61  ;;  %vm288_vm6 = vcmask 138240  }
  0x18   : > { %v1367_v1 = vld [vmem:[%s236_s10] ss:$0 sm:$0xff]  ;;  %330 = vadd.xlane.f32.xlu1 %v329_v15  ;;  %v335_v52 = vsel %vm325_vm1, %v319_v51, 0.0  ;;  %v274_v62 = vunpack.c.0.s8 %v273_v60  ;;  %s233_s17 = scalar_lea.vmem %s1932_s0, %s1400_s14  ;;  %v324_v7 = vmul.f32 %v1721_v6, %v1721_v6  ;;  %vm296_vm7 = vcmask 134144   ;;  %vm294_vm8 = vmor %vm293_vm5, %vm292_vm4  ;;  %s1543_s30 = smov 110  }
  0x19   : > { %v245_v2 = vmul.f32 %v1367_v1, %v238_v0  ;;  %v370_v23 = vand.u32 15, %v1734_v16  ;;  %s1548_s10 = smov 95   ;;  %s1549_s11 = smov 112   ;;  %vm794_vm11 = vcmask 908288   ;;  %vm418_vm12 = vcmask 1043456  }
  0x1a   : > { %v277_v0 = vsub.s32 %v274_v62, %v276_v63  ;;  %v350_v10 = vsel %vm325_vm1, %v324_v7, 0.0  ;;  %s1550_s12 = smov 94   ;;  %vm888_vm13 = vcmask 900096   ;;  %vm989_vm3 = vcmask 785408   ;;  %s226_s13 = sand.u32 1, %s1529_s19  }
  0x1b   : > { %v247_v3 = vsel %vm246_vm0, %v245_v2, 0.0  ;;  %v267_v2 = vld [vmem:[%s233_s17] sm:$0xff]  ;;  %vm1743_vm9 = vcmp.ge.s32.totalorder %v370_v23, 1  ;;  %vm1796_vm14 = vcmp.lt.s32.totalorder %v370_v23, 15  ;;  %vm412_vm0 = vcmask 1039360   ;;  %s1364_s14 = sshll.u32 %s226_s13, 4 }
  0x1c   : > { %248 = vadd.xlane.f32.xlu0 %v247_v3  ;;  %333 = vadd.xlane.f32.xlu1 %v332_v19  ;;  %vm692_vm4 = vcmask 916480   ;;  %vm1091_vm5 = vcmask 777216   ;;  %s1401_s15 = sshll.u32 %s1603_s22, 8  ;;  %s228_s16 = scalar_lea.vmem [#allocation3], %s1364_s14 }
  0x1d   : > { %s1292_s17 = sshll.u32 %s228_s16, 4  ;;  %s1890_s26 = scalar_lea.hbm %s1937_s5, %s1401_s15  ;;  %s1892_s17 = int_to_ptr.vmem [resolvable:$true] %s1292_s17 }
  0x1e   : > { %s1278_s22 = scalar_lea.sflag [#allocation4], %s226_s13 }
  0x20   : > { %339 = vadd.xlane.f32.xlu1 %v338_v22  ;;  %v1737_v22 = vadd.s32 128, %v1734_v16 }
  0x24   : > { %342 = vadd.xlane.f32.xlu1 %v341_v24  ;;  %v377_v24 = vand.u32 15, %v1737_v22 }
  0x26   : > { %vm1751_vm10 = vcmp.ge.s32.totalorder %v377_v24, 1  ;;  %vm1802_vm15 = vcmp.lt.s32.totalorder %v377_v24, 15 }
  0x28   : > { %345 = vadd.xlane.f32.xlu1 %v344_v31 }
  0x2c   : > { %348 = vadd.xlane.f32.xlu1 %v347_v32 }
  0xa1   : > { %v328_v53 = vpop.xlane.xlu1 %327 }
  0xa5   : > { %v331_v54 = vpop.xlane.xlu1 %330 }
  0xa6   : > { %v353_v55 = vadd.f32 %v331_v54, %v328_v53 }
  0xa9   : > { %v249_v34 = vpop.xlane.xlu0 %248  ;;  %v334_v56 = vpop.xlane.xlu1 %333 }
  0xaa   : > { %v250_v35 = vmul.f32 0.35355338, %v249_v34  ;;  %v1708_v57 = vadd.f32 %v353_v55, %v334_v56 }
  0xac   : > { %v252_v36 = vadd.f32 %v251_v33, %v250_v35 }
  0xad   : > { %v1726_v11 = vpop.xlane.xlu1 %339 }
  0xae   : > { %v253_v37 = vmul.f32 %v252_v36, %v252_v36 }
  0xb0   : > { %v255_v38 = vsel %vm254_vm2, %v253_v37, 0.0  ;;  %vm591_vm2 = vcmask 1031168  }
  0xb1   : > { %v256_v39 = vrot.slane %v255_v38, 4  ;;  %v1728_v13 = vpop.xlane.xlu1 %342 }
  0xb3   : > { %v257_v40 = vadd.f32 %v256_v39, %v255_v38 }
  0xb5   : > { %v258_v41 = vrot.slane %v257_v40, 2  ;;  %v1730_v14 = vpop.xlane.xlu1 %345 }
  0xb7   : > { %v259_v42 = vadd.f32 %v258_v41, %v257_v40 }
  0xb9   : > { %v260_v43 = vrot.slane %v259_v42, 1  ;;  %v1732_v15 = vpop.xlane.xlu1 %348 }
  0xbb   : > { %v261_v44 = vadd.f32 %v260_v43, %v259_v42 }
  0xbd   : > { %v263_v45 = vmul.f32 0.25, %v261_v44 }
  0xbf   : > { %v264_v46 = vadd.f32 1e-08, %v263_v45 }
  0xc1   : > { %1471 = vrsqrt.f32 %v264_v46 }
  0xcb   : > { %v1472_v47 = vpop.eup %1471 }
  0xcc   : > { %v266_v48 = vmul.f32 %v1472_v47, %v252_v36 }
  0xce   : > { %270 = vperm.xlu0 %1469, %v266_v48  }
  0xed   : > { %336 = vadd.xlane.f32.xlu0 %v335_v52 }
 0x14d   : > { %v271_v1 = vpop.permute.xlu0 %270 }
 0x14e   : > { %v278_v3 = vrot.slane %v271_v1, %v277_v0 }
 0x150   : > { %v280_v4 = vmul.f32 %v278_v3, %v267_v2 }
 0x152   : > { %285 = vrot.lane.b32.xlu1 %v280_v4, %s1542_s23 }
 0x176   : > { %351 = vadd.xlane.f32.xlu1 %v350_v10 }
 0x17a   : > { %v337_v41 = vpop.xlane.xlu0 %336 }
 0x17b   : > { %v355_v42 = vadd.f32 %v1708_v57, %v337_v41 }
 0x17d   : > { %v356_v43 = vadd.f32 %v355_v42, %v1726_v11 }
 0x17f   : > { %v357_v44 = vadd.f32 %v356_v43, %v1728_v13 }
 0x181   : > { %v358_v45 = vadd.f32 %v357_v44, %v1730_v14 }
 0x183   : > { %v359_v47 = vadd.f32 %v358_v45, %v1732_v15 }
 0x1c4   : > { %v286_v18 = vpop.permute.xlu1 %285 }
 0x1c5   : > { %v287_v19 = vrot.slane %v286_v18, 4 }
 0x1c7   : > { %v289_v20 = vsel %vm288_vm6, %v287_v19, %v286_v18  ;;  %297 = vst.msk [vmem:[#allocation2 + $0x8] sm:$0xf] %vm296_vm7, %v287_v19  ;;  %vm1185_vm6 = vcmask 769024  }
 0x1c8   : > { %295 = vst.msk [vmem:[#allocation2] sm:$0xff] %vm294_vm8, %v289_v20 }
 0x1ce   : > { %v878_v26 = vld [vmem:[#allocation2 + $0x8] sm:$0xf] }
 0x1cf   : > { %v783_v29 = vld [vmem:[#allocation2 + $0x8] sm:$0xf]  ;;  %886 = vrot.lane.b32.xlu1 %v878_v26, %s1543_s30  ;;  %v1747_v30 = vld [vmem:[#allocation2] sm:$0xff] }
 0x1d0   : > { %792 = vrot.lane.b32.xlu0 %v783_v29, %s1544_s6  ;;  %v1757_v32 = vcombine.high %v1747_v30, %v1747_v30  ;;  %v400_v33 = vsel %vm1743_vm9, %v1747_v30, 0.0  ;;  %v575_v34 = vld [vmem:[#allocation2 + $0x8] sm:$0xf] }
 0x1d1   : > { %v403_v35 = vld [vmem:[#allocation2 + $0x8] sm:$0xf] }
 0x1d2   : > { %v401_v36 = vsel %vm1751_vm10, %v1757_v32, 0.0  ;;  %v979_v37 = vld [vmem:[#allocation2 + $0x8] sm:$0xf] }
 0x1d3   : > { %589 = vrot.lane.b32.xlu1 %v575_v34, %s1545_s7  ;;  %v1080_v38 = vld [vmem:[#allocation2 + $0x8] sm:$0xf] }
 0x1d4   : > { %410 = vrot.lane.b32.xlu0 %v403_v35, %s1546_s8  ;;  %v682_v39 = vld [vmem:[#allocation2 + $0x8] sm:$0xf] }
 0x1d5   : > { %v1175_v40 = vld [vmem:[#allocation2 + $0x8] sm:$0xf] }
 0x1d7   : > { %788 = vrot.lane.b32.xlu1 %v1747_v30, %s1544_s6 }
 0x1d8   : > { %987 = vrot.lane.b32.xlu0 %v979_v37, %s1547_s9 }
 0x1db   : > { %882 = vrot.lane.b32.xlu1 %v1747_v30, %s1543_s30 }
 0x1dc   : > { %406 = vrot.lane.b32.xlu0 %v1747_v30, %s1546_s8 }
 0x1df   : > { %983 = vrot.lane.b32.xlu1 %v1747_v30, %s1547_s9 }
 0x1e0   : > { %1089 = vrot.lane.b32.xlu0 %v1080_v38, %s1548_s10 }
 0x1e3   : > { %790 = vrot.lane.b32.xlu1 %v1757_v32, %s1544_s6  ;;  %s1551_s6 = smov [#allocation3]  }
 0x1e4   : > { %585 = vrot.lane.b32.xlu0 %v1747_v30, %s1545_s7 }
 0x1e7   : > { %884 = vrot.lane.b32.xlu1 %v1757_v32, %s1543_s30  ;;  %s1475_s30 = scalar_lea.vmem %s1892_s17, 256 }
 0x1e8   : > { %587 = vrot.lane.b32.xlu0 %v1757_v32, %s1545_s7  ;;  %p1476_p11 = scmp.ne.s32.totalorder %s1892_s17, %s1475_s30  ;;  %s1479_s7 = sshll.u32 %s1551_s6, 4  ;;  %s1480_s7 = int_to_ptr.vmem [resolvable:$false] %s1479_s7 }
 0x1e9   : > { %p1482_p0 = scmp.lt.s32.totalorder %s1892_s17, %s1480_s7 }
 0x1ea   : > { %p1477_p12 = pnand %p1476_p11, %p1620_p5 }
 0x1eb   : > { %408 = vrot.lane.b32.xlu1 %v1757_v32, %s1546_s8  ;;  %s1481_s8 = scalar_lea.vmem %s1480_s7, 512 }
 0x1ec   : > { %688 = vrot.lane.b32.xlu0 %v1757_v32, %s1549_s11  ;;  %p1478_p13 = pneg %p1477_p12  ;;  %p1483_p1 = scmp.lt.s32.totalorder %s1481_s8, %s1475_s30 }
 0x1ee   : > { %p1484_p2 = por %p1483_p1, %p1482_p0 }
 0x1ef   : > { %985 = vrot.lane.b32.xlu1 %v1757_v32, %s1547_s9 }
 0x1f0   : > { %1181 = vrot.lane.b32.xlu0 %v1757_v32, %s1550_s12  ;;  %p1485_p3 = pnand %p1484_p2, %p1478_p13 }
 0x1f3   : > { %1085 = vrot.lane.b32.xlu1 %v1747_v30, %s1548_s10 }
 0x1f4   : > { %686 = vrot.lane.b32.xlu0 %v1747_v30, %s1549_s11 }
 0x1f7   : > { %690 = vrot.lane.b32.xlu1 %v682_v39, %s1549_s11 }
 0x1fb   : > { %1087 = vrot.lane.b32.xlu1 %v1757_v32, %s1548_s10 }
 0x1ff   : > { %1183 = vrot.lane.b32.xlu1 %v1175_v40, %s1550_s12 }
 0x203   : > { %1179 = vrot.lane.b32.xlu1 %v1747_v30, %s1550_s12  ;;  %v352_v46 = vpop.xlane.xlu1 %351 }
 0x204   : > { %v360_v51 = vadd.f32 %v359_v47, %v352_v46 }
 0x206   : > { %v361_v54 = vadd.f32 1e-08, %v360_v51 }
 0x208   : > { %1473 = vrsqrt.f32 %v361_v54 }
 0x212   : > { %v1788_v62 = vpop.eup %1473 }
 0x213   : > { %v784_v3 = vmul.f32 %v1788_v62, %v1667_v17  ;;  %v404_v22 = vmul.f32 %v1788_v62, %v1652_v9  ;;  %v895_v23 = vmul.f32 %v1788_v62, %v1675_v21  ;;  %v402_v35 = vmul.f32 %v1788_v62, %v1650_v8 }
 0x214   : > { %v598_v44 = vmul.f32 %v1788_v62, %v1658_v12  ;;  %v1081_v31 = vmul.f32 %v1788_v62, %v1689_v28  ;;  %v1192_v51 = vmul.f32 %v1788_v62, %v1721_v6 }
 0x241   : > { %v887_v49 = vpop.permute.xlu1 %886 }
 0x242   : > { %v793_v48 = vpop.permute.xlu0 %792 }
 0x245   : > { %v590_v53 = vpop.permute.xlu1 %589 }
 0x246   : > { %v411_v52 = vpop.permute.xlu0 %410 }
 0x249   : > { %v789_v56 = vpop.permute.xlu1 %788 }
 0x24a   : > { %v988_v55 = vpop.permute.xlu0 %987 }
 0x24d   : > { %v883_v57 = vpop.permute.xlu1 %882 }
 0x24e   : > { %v407_v59 = vpop.permute.xlu0 %406 }
 0x251   : > { %v984_v61 = vpop.permute.xlu1 %983 }
 0x252   : > { %v1786_v60 = vpop.permute.xlu0 %1089 }
 0x255   : > { %v791_v0 = vpop.permute.xlu1 %790 }
 0x256   : > { %v586_v63 = vpop.permute.xlu0 %585  ;;  %v796_v1 = vsel %vm794_vm11, %v791_v0, %v793_v48  ;;  %v795_v2 = vsel %vm794_vm11, %v789_v56, %v791_v0 }
 0x257   : > { %1380 = vmatprep.subr.msk.mxu0 %vm418_vm12, %v796_v1 }
 0x258   : > { %1381 = vmatpush1.msk.msra.mxu0 %vm418_vm12, %v795_v2 }
 0x259   : > { %1382 = vmatmul.mubr.msk.f32.vlgmr.msra.gmra.mrb[0].mxu0 %vm325_vm1, %v784_v3  ;;  %v885_v10 = vpop.permute.xlu1 %884 }
 0x25a   : > { %v588_v7 = vpop.permute.xlu0 %587  ;;  %v889_v17 = vsel %vm888_vm13, %v883_v57, %v885_v10  ;;  %v890_v11 = vsel %vm888_vm13, %v885_v10, %v887_v49  ;;  %969 = vmatprep.mubr.f32.mxu0 %v1540_v58  ;;  %v699_v49 = vmul.f32 %v1788_v62, %v1703_v50 }
 0x25b   : > { %v893_v13 = vsel %vm1796_vm14, %v889_v17, 0.0  ;;  %v894_v14 = vsel %vm1802_vm15, %v890_v11, 0.0  ;;  %v593_v19 = vsel %vm591_vm2, %v588_v7, %v590_v53 }
 0x25c   : > { %1383 = vmatprep.subr.msk.mxu0 %vm418_vm12, %v894_v14  ;;  %v597_v26 = vsel %vm1802_vm15, %v593_v19, 0.0 }
 0x25d   : > { %1384 = vmatpush1.msk.msra.mxu0 %vm418_vm12, %v893_v13  ;;  %v409_v15 = vpop.permute.xlu1 %408 }
 0x25e   : > { %v414_v16 = vsel %vm412_vm0, %v409_v15, %v411_v52  ;;  %v413_v18 = vsel %vm412_vm0, %v407_v59, %v409_v15  ;;  %v689_v20 = vpop.permute.xlu0 %688 }
 0x25f   : > { %1368 = vmatprep.subr.msk.mxu1 %vm418_vm12, %v414_v16 }
 0x260   : > { %1369 = vmatpush1.msk.msra.mxu1 %vm418_vm12, %v413_v18 }
 0x261   : > { %1370 = vmatmul.mubr.msk.f32.vlgmr.msra.gmra.mrb[0].mxu1 %vm325_vm1, %v404_v22  ;;  %1371 = vmatprep.subr.msk.mxu1 %vm418_vm12, %v401_v36  ;;  %v986_v24 = vpop.permute.xlu1 %985  ;;  %v996_v36 = vmul.f32 %v1788_v62, %v1687_v27 }
 0x262   : > { %1385 = vmatmul.mubr.msk.f32.vlgmr.msra.gmra.mrb[0].mxu0 %vm325_vm1, %v895_v23  ;;  %v990_v9 = vsel %vm989_vm3, %v984_v61, %v986_v24  ;;  %v991_v29 = vsel %vm989_vm3, %v986_v24, %v988_v55  ;;  %1372 = vmatpush1.msk.msra.mxu1 %vm418_vm12, %v400_v33  ;;  %v1182_v34 = vpop.permute.xlu0 %1181  ;;  %v592_v33 = vsel %vm591_vm2, %v586_v63, %v588_v7 }
 0x263   : > { %v994_v21 = vsel %vm1743_vm9, %v990_v9, 0.0  ;;  %v995_v32 = vsel %vm1751_vm10, %v991_v29, 0.0  ;;  %1374 = vmatprep.subr.msk.mxu1 %vm418_vm12, %v597_v26  ;;  %567 = vmatprep.mubr.f32.mxu1 %v1540_v58  ;;  %v596_v37 = vsel %vm1796_vm14, %v592_v33, 0.0 }
 0x264   : > { %1386 = vmatprep.subr.msk.mxu0 %vm418_vm12, %v995_v32  ;;  %1070 = vmatprep.mubr.f32.mxu0 %v1540_v58 }
 0x265   : > { %1387 = vmatpush1.msk.msra.mxu0 %vm418_vm12, %v994_v21  ;;  %v1086_v30 = vpop.permute.xlu1 %1085 }
 0x266   : > { %v687_v40 = vpop.permute.xlu0 %686 }
 0x267   : > { %v693_v27 = vsel %vm692_vm4, %v687_v40, %v689_v20 }
 0x268   : > { %v697_v45 = vsel %vm1743_vm9, %v693_v27, 0.0 }
 0x269   : > { %1373 = vmatmul.mubr.msk.f32.vlgmr.msra.gmra.mrb[0].mxu1 %vm325_vm1, %v402_v35  ;;  %v691_v38 = vpop.permute.xlu1 %690 }
 0x26a   : > { %1375 = vmatpush1.msk.msra.mxu1 %vm418_vm12, %v596_v37  ;;  %1388 = vmatmul.mubr.msk.f32.vlgmr.msra.gmra.mrb[0].mxu0 %vm325_vm1, %v996_v36  ;;  %v694_v39 = vsel %vm692_vm4, %v689_v20, %v691_v38 }
 0x26b   : > { %v698_v41 = vsel %vm1751_vm10, %v694_v39, 0.0  ;;  %672 = vmatprep.mubr.f32.mxu1 %v1540_v58  ;;  %1165 = vmatprep.mubr.f32.mxu0 %v1540_v58 }
 0x26c   : > { %1377 = vmatprep.subr.msk.mxu1 %vm418_vm12, %v698_v41 }
 0x26d   : > { %v1088_v8 = vpop.permute.xlu1 %1087 }
 0x26e   : > { %v1092_v42 = vsel %vm1091_vm5, %v1086_v30, %v1088_v8  ;;  %v1093_v43 = vsel %vm1091_vm5, %v1088_v8, %v1786_v60 }
 0x26f   : > { %1389 = vmatprep.subr.msk.mxu0 %vm418_vm12, %v1093_v43 }
 0x270   : > { %1390 = vmatpush1.msk.msra.mxu0 %vm418_vm12, %v1092_v42 }
 0x271   : > { %1376 = vmatmul.mubr.msk.f32.vlgmr.msra.gmra.mrb[0].mxu1 %vm325_vm1, %v598_v44  ;;  %v1184_v46 = vpop.permute.xlu1 %1183 }
 0x272   : > { %1378 = vmatpush1.msk.msra.mxu1 %vm418_vm12, %v697_v45  ;;  %1391 = vmatmul.mubr.msk.f32.vlgmr.msra.gmra.mrb[0].mxu0 %vm325_vm1, %v1081_v31  ;;  %v1187_v47 = vsel %vm1185_vm6, %v1182_v34, %v1184_v46 }
 0x273   : > { %v1191_v12 = vsel %vm1802_vm15, %v1187_v47, 0.0  ;;  %773 = vmatprep.mubr.f32.mxu1 %v1540_v58  ;;  %1266 = vmatprep.mubr.f32.mxu0 %v1540_v58 }
 0x274   : > { %1392 = vmatprep.subr.msk.mxu0 %vm418_vm12, %v1191_v12 }
 0x275   : > { %v1180_v28 = vpop.permute.xlu1 %1179 }
 0x276   : > { %v1186_v25 = vsel %vm1185_vm6, %v1180_v28, %v1182_v34 }
 0x277   : > { %v1190_v48 = vsel %vm1796_vm14, %v1186_v25, 0.0 }
 0x278   : > { %1393 = vmatpush1.msk.msra.mxu0 %vm418_vm12, %v1190_v48 }
 0x279   : > { %1379 = vmatmul.mubr.msk.f32.vlgmr.msra.gmra.mrb[0].mxu1 %vm325_vm1, %v699_v49 }
 0x27a   : > { %1394 = vmatmul.mubr.msk.f32.vlgmr.msra.gmra.mrb[0].mxu0 %vm325_vm1, %v1192_v51 }
 0x34c   : > { %v775_v58 = vpop.f32.mrb[0].mxu1 }
 0x34d   : > { %v1268_v52 = vpop.f32.mrb[0].mxu0  ;;  %v777_v53 = vpop.f32.mrb[1].mxu1 }
 0x34e   : > { %v1402_v54 = vadd.f32 %v1268_v52, %v775_v58  ;;  %v1270_v50 = vpop.f32.mrb[1].mxu0 }
 0x34f   : > { %v1403_v55 = vadd.f32 %v1270_v50, %v777_v53 }
 0x350   : > { %1275 = vst [vmem:[%s228_s16] sm:$0xff] %v1402_v54 }
 0x351   : > { %1276 = vst [vmem:[%s228_s16 + $0x8] sm:$0xff] %v1403_v55 }
 0x352   : > { %1488 = shalt.err (!%p1485_p3)
}
 0x353   : > { %s1489_s9 = scalar_lea.hbm %s1890_s26, 256  ;;  %s1493_s12 = scalar_lea.hbm %s1937_s5, 512 }
 0x354   : > { %p1490_p4 = scmp.ne.s32.totalorder %s1890_s26, %s1489_s9  ;;  %p1494_p9 = scmp.lt.u32.totalorder %s1890_s26, %s1937_s5 }
 0x355   : > { %p1495_p10 = scmp.lt.u32.totalorder %s1493_s12, %s1489_s9  ;;  %p1497_p12 = scmp.lt.u32.totalorder %s1489_s9, %s1890_s26 }
 0x356   : > { %p1491_p7 = pnand %p1490_p4, %p1620_p5 }
 0x357   : > { %p1496_p11 = por %p1495_p10, %p1494_p9 }
 0x358   : > { %p1492_p8 = pneg %p1491_p7 }
 0x359   : > { %p1498_p13 = por %p1497_p12, %p1496_p11 }
 0x35b   : > { %p1499_p0 = pnand %p1498_p13, %p1492_p8 }
 0x35d   : > { %1502 = shalt.err (!%p1499_p0)
}
 0x35e   : > { %1418 = dma.vmem_to_hbm [thread:$0]  (%p1620_p5), %s1892_s17, 256, %s1890_s26, %s1278_s22  }
 0x35f PF: > { %p1424_p1 = scmp.ge.s32.totalorder %s1537_s21, 2  ;;  %s1304_s15 = sand.u32 1, %s1525_s18  }
 0x360   : > { %s1305_s16 = scalar_lea.sflag [#allocation4], %s1304_s15 }
 0x361   : > { %p1421_p2 = pnand %p1424_p1, %p1624_p6 }
 0x363   : > { %1520 = dma.done.wait (!%p1421_p2), %s1305_s16, 256  }
 0x364   : > { %1522 = vsyncadd (!%p1421_p2), %s1305_s16, 4294967040  ;;  %p15_p3 = scmp.ge.s32.totalorder %s1607_s24, 4   ;;  %s1948_s18 = smov %s1529_s19 }
 0x365   : > { %s1949_s19 = smov %s1533_s20  ;;  %s1950_s20 = smov %s1618_s27 }
 0x366   : > { %s1951_s21 = smov %s1607_s24  ;;  %17 = sbr.rel (!%p15_p3) target bundleno = 3 (0x3), region = 78 }
 0x36d   :  { %1310 = vsyncpa [#allocation4], 1 }
 0x36e   :  { %1312 = vsyncpa [#allocation4 + $0x1], 1 }

</bundles_post_ra>
